<compile_context>
chip_gen: v5e
topology: v5e:2x2
jax: 0.10.0
libtpu: 0.0.40
codegen_flags: <defaults>
</compile_context>

<pallas_src>
import functools

import jax
import jax.numpy as jnp
from jax.experimental import pallas as pl
from jax.experimental.pallas import tpu as pltpu


def _round_up(x, m):
    return ((x + m - 1) // m) * m


def _film_kernel(x_ref, w_ref, freq_ref, fb_ref, o_ref, *, matmul_dtype):
    # x_ref:    (TILE_N, D_in)  activation tile in the caller dtype (cast here)
    # w_ref:    (D_in, H)       weight, resident across the whole grid
    # freq_ref: (1, H)          f32 per-batch FiLM frequency
    # fb_ref:   (1, H)          f32 precomputed freq*bias + phase_shift
    # o_ref:    (TILE_N, H)
    x = x_ref[...]
    if x.dtype != matmul_dtype:
        x = x.astype(matmul_dtype)
    h = jnp.dot(x, w_ref[...], preferred_element_type=jnp.float32)
    # FiLM affine + sine stay in f32 (freq ~ 30 amplifies any error in h).
    o_ref[...] = jnp.sin(freq_ref[...] * h + fb_ref[...]).astype(o_ref.dtype)


def film_layer(x, weight, bias, freq, phase_shift, *, tile_n=2048,
               matmul_dtype=jnp.bfloat16, out_dtype=None):
    """FiLM layer forward.

    x:                  (B, N, D_in)
    weight:             (H, D_in)   -- PyTorch nn.Linear layout
    bias:               (H,)
    freq, phase_shift:  (B, H)      -- broadcast over the N axis
    returns             (B, N, H) in out_dtype (default: x.dtype)
    """
    B, N, D_in = x.shape
    H = weight.shape[0]
    out_dtype = jnp.dtype(out_dtype) if out_dtype is not None else jnp.dtype(x.dtype)
    mm_dtype = jnp.dtype(matmul_dtype) if matmul_dtype is not None else jnp.dtype(x.dtype)

    # Sequence tile: 256-aligned cap (MXU-friendly), 8-sublane floor for small N.
    tn = min(_round_up(N, 8), _round_up(max(tile_n, 256), 256))
    if B == 1:
        # Keep >= 2 N-tiles when possible so the grid spans both v7x TensorCores.
        tn = min(tn, max(8, _round_up(-(-N // 2), 8)))
    n_tiles = pl.cdiv(N, tn)

    # Small one-time wrapper ops (no extra pass over x / out).
    w_mm = weight.T.astype(mm_dtype)                                       # (D_in, H)
    freq32 = freq.astype(jnp.float32)
    fb32 = freq32 * bias.astype(jnp.float32) + phase_shift.astype(jnp.float32)
    freq_p = freq32[:, None, :]                                            # (B, 1, H)
    fb_p = fb32[:, None, :]                                                # (B, 1, H)

    # VMEM budget: double-buffered x/out tiles + resident weight / FiLM vectors,
    # accounted at their lane-padded VMEM footprint, 1.25x + 2 MiB headroom,
    # clamped to [16 MiB, 48 MiB] (safe on v5e/v6e 128 MiB and v7x 64 MiB).
    Dr = _round_up(D_in, 128)
    Hr = _round_up(H, 128)
    need = (2 * tn * Dr * jnp.dtype(x.dtype).itemsize      # x tiles (dbl buffered)
            + 2 * tn * Hr * out_dtype.itemsize             # out tiles (dbl buffered)
            + tn * Hr * 4                                  # f32 h intermediate
            + 2 * _round_up(D_in, 8) * Hr * mm_dtype.itemsize   # weight
            + 4 * 8 * Hr * 4)                              # freq / fb
    vmem_limit = int(min(max(int(1.25 * need) + (2 << 20), 16 << 20), 48 << 20))

    kernel = functools.partial(_film_kernel, matmul_dtype=mm_dtype)

    def call(resident_mode):
        def spec(shape, index_map):
            if resident_mode is None:
                return pl.BlockSpec(shape, index_map)
            return pl.BlockSpec(shape, index_map, pipeline_mode=resident_mode)

        return pl.pallas_call(
            kernel,
            out_shape=jax.ShapeDtypeStruct((B, N, H), out_dtype),
            grid=(B, n_tiles),           # N-tile axis innermost: weight/freq/fb resident
            in_specs=[
                pl.BlockSpec((None, tn, D_in), lambda b, n: (b, n, 0)),   # x tile
                spec((D_in, H), lambda b, n: (0, 0)),                     # weight
                spec((None, 1, H), lambda b, n: (b, 0, 0)),               # freq
                spec((None, 1, H), lambda b, n: (b, 0, 0)),               # freq*b + phase
            ],
            out_specs=pl.BlockSpec((None, tn, H), lambda b, n: (b, n, 0)),
            compiler_params=pltpu.CompilerParams(
                dimension_semantics=("parallel", "parallel"),
                vmem_limit_bytes=vmem_limit),
        )(x, w_mm, freq_p, fb_p)

    # Operands whose block index is constant over the inner axis only need a
    # single VMEM buffer; fall back to default double-buffering if this JAX
    # build rejects pipeline_mode / Buffered(1).
    try:
        return call(pl.Buffered(1))
    except Exception:
        return call(None)


if __name__ == "__main__":
    key = jax.random.PRNGKey(0)
    k_w, k_b, k_x, k_f, k_p = jax.random.split(key, 5)

    B, N, D_in, H = 2, 8, 16, 32

    # Deterministic nn.Linear-style init: U(-1/sqrt(D_in), 1/sqrt(D_in)).
    bound = 1.0 / (D_in ** 0.5)
    weight = jax.random.uniform(k_w, (H, D_in), jnp.float32, -bound, bound)
    bias = jax.random.uniform(k_b, (H,), jnp.float32, -bound, bound)

    x = jax.random.normal(k_x, (B, N, D_in), jnp.float32)
    freq = jax.random.normal(k_f, (B, H), jnp.float32) * 15.0 + 30.0   # SIREN-like
    phase_shift = jax.random.normal(k_p, (B, H), jnp.float32)

    out = jax.block_until_ready(film_layer(x, weight, bias, freq, phase_shift))
    assert out.shape == (B, N, H)

    # True f32 reference of the PyTorch forward.
    h32 = jnp.einsum("bnd,hd->bnh", x, weight,
                     preferred_element_type=jnp.float32,
                     precision=jax.lax.Precision.HIGHEST)
    ref32 = jnp.sin(freq[:, None, :] * (h32 + bias[None, None, :])
                    + phase_shift[:, None, :])

    # Reference matched to the kernel's default matmul precision (bf16 MXU
    # inputs, f32 accumulation); the FiLM affine + sin are f32 in both.
    hbf = jnp.einsum("bnd,hd->bnh", x.astype(jnp.bfloat16),
                     weight.astype(jnp.bfloat16),
                     preferred_element_type=jnp.float32)
    refbf = jnp.sin(freq[:, None, :] * (hbf + bias[None, None, :])
                    + phase_shift[:, None, :])

    assert jnp.allclose(out, refbf, atol=2e-3, rtol=2e-3), "mismatch vs bf16-matched ref"
    # bf16 quantization error in h is amplified ~|freq| (~30-75x) in the sine arg.
    assert jnp.allclose(out, ref32, atol=0.5), "mismatch vs f32 reference"

    # Accuracy escape hatch: full-f32 matmul path, checked tightly vs the f32 ref.
    out32 = jax.block_until_ready(
        film_layer(x, weight, bias, freq, phase_shift, matmul_dtype=jnp.float32))
    assert jnp.allclose(out32, ref32, atol=5e-3, rtol=5e-3), "f32 path mismatch vs f32 ref"

    print("KERNEL_OK")
</pallas_src>

<mosaic_0001>
module attributes {stable_mosaic.version = 11 : i64} {
  func.func @_film_kernel(%arg0: i32, %arg1: i32, %arg2: memref<1x8x16xf32, #tpu.memory_space<vmem>>, %arg3: memref<16x32xbf16, #tpu.memory_space<vmem>>, %arg4: memref<1x1x32xf32, #tpu.memory_space<vmem>>, %arg5: memref<1x1x32xf32, #tpu.memory_space<vmem>>, %arg6: memref<1x8x32xf32, #tpu.memory_space<vmem>>) attributes {dimension_semantics = [#tpu.dimension_semantics<parallel>, #tpu.dimension_semantics<parallel>], iteration_bounds = array<i64: 2, 1>, scalar_prefetch = 0 : i64, scratch_operands = 0 : i64, tpu.core_type = #tpu.core_type<tc>, window_params = [{transform_indices = @transform_0, window_bounds = array<i64: 1, 8, 16>}, {pipeline_mode = #tpu.pipeline_mode<synchronous>, transform_indices = @transform_1, window_bounds = array<i64: 16, 32>}, {pipeline_mode = #tpu.pipeline_mode<synchronous>, transform_indices = @transform_2, window_bounds = array<i64: 1, 1, 32>}, {pipeline_mode = #tpu.pipeline_mode<synchronous>, transform_indices = @transform_3, window_bounds = array<i64: 1, 1, 32>}, {transform_indices = @transform_4, window_bounds = array<i64: 1, 8, 32>}]} {
    %c0 = arith.constant 0 : index
    %c0_0 = arith.constant 0 : index
    %c0_1 = arith.constant 0 : index
    %0 = vector.load %arg2[%c0, %c0_0, %c0_1] : memref<1x8x16xf32, #tpu.memory_space<vmem>>, vector<1x8x16xf32>
    %1 = vector.shape_cast %0 : vector<1x8x16xf32> to vector<8x16xf32>
    %2 = arith.truncf %1 : vector<8x16xf32> to vector<8x16xbf16>
    %c0_2 = arith.constant 0 : index
    %c0_3 = arith.constant 0 : index
    %3 = vector.load %arg3[%c0_2, %c0_3] : memref<16x32xbf16, #tpu.memory_space<vmem>>, vector<16x32xbf16>
    %cst = arith.constant dense<0.000000e+00> : vector<8x32xf32>
    %4 = tpu.matmul %2, %3, %cst {dimension_numbers = #tpu.dot_dimension_numbers<[1], [0], [0], [1], [0, 0, 1, 1], [], []>} : vector<8x16xbf16>, vector<16x32xbf16>, vector<8x32xf32> -> vector<8x32xf32>
    %c0_4 = arith.constant 0 : index
    %c0_5 = arith.constant 0 : index
    %c0_6 = arith.constant 0 : index
    %5 = vector.load %arg4[%c0_4, %c0_5, %c0_6] : memref<1x1x32xf32, #tpu.memory_space<vmem>>, vector<1x1x32xf32>
    %6 = vector.shape_cast %5 : vector<1x1x32xf32> to vector<1x32xf32>
    %7 = vector.broadcast %6 : vector<1x32xf32> to vector<8x32xf32>
    %8 = arith.mulf %7, %4 : vector<8x32xf32>
    %c0_7 = arith.constant 0 : index
    %c0_8 = arith.constant 0 : index
    %c0_9 = arith.constant 0 : index
    %9 = vector.load %arg5[%c0_7, %c0_8, %c0_9] : memref<1x1x32xf32, #tpu.memory_space<vmem>>, vector<1x1x32xf32>
    %10 = vector.shape_cast %9 : vector<1x1x32xf32> to vector<1x32xf32>
    %11 = vector.broadcast %10 : vector<1x32xf32> to vector<8x32xf32>
    %12 = arith.addf %8, %11 : vector<8x32xf32>
    %13 = math.sin %12 : vector<8x32xf32>
    %c0_10 = arith.constant 0 : index
    %c0_11 = arith.constant 0 : index
    %c0_12 = arith.constant 0 : index
    %14 = vector.load %arg6[%c0_10, %c0_11, %c0_12] : memref<1x8x32xf32, #tpu.memory_space<vmem>>, vector<1x8x32xf32>
    %15 = vector.shape_cast %14 : vector<1x8x32xf32> to vector<8x32xf32>
    %16 = vector.shape_cast %13 : vector<8x32xf32> to vector<1x8x32xf32>
    tpu.vector_store %arg6[%c0_10, %c0_11, %c0_12], %16 {strides = array<i32>} : memref<1x8x32xf32, #tpu.memory_space<vmem>>, vector<1x8x32xf32>,
    return
  }
  func.func @transform_0(%arg0: i32, %arg1: i32) -> (i32, i32, i32) {
    %c0_i32 = arith.constant 0 : i32
    %c0_i32_0 = arith.constant 0 : i32
    return %arg0, %arg1, %c0_i32 : i32, i32, i32
  }
  func.func @transform_1(%arg0: i32, %arg1: i32) -> (i32, i32) {
    %c0_i32 = arith.constant 0 : i32
    %c0_i32_0 = arith.constant 0 : i32
    %c0_i32_1 = arith.constant 0 : i32
    return %c0_i32, %c0_i32_0 : i32, i32
  }
  func.func @transform_2(%arg0: i32, %arg1: i32) -> (i32, i32, i32) {
    %c0_i32 = arith.constant 0 : i32
    %c0_i32_0 = arith.constant 0 : i32
    %c0_i32_1 = arith.constant 0 : i32
    return %arg0, %c0_i32, %c0_i32_0 : i32, i32, i32
  }
  func.func @transform_3(%arg0: i32, %arg1: i32) -> (i32, i32, i32) {
    %c0_i32 = arith.constant 0 : i32
    %c0_i32_0 = arith.constant 0 : i32
    %c0_i32_1 = arith.constant 0 : i32
    return %arg0, %c0_i32, %c0_i32_0 : i32, i32, i32
  }
  func.func @transform_4(%arg0: i32, %arg1: i32) -> (i32, i32, i32) {
    %c0_i32 = arith.constant 0 : i32
    %c0_i32_0 = arith.constant 0 : i32
    return %arg0, %arg1, %c0_i32 : i32, i32, i32
  }
}

module attributes {stable_mosaic.version = 11 : i64} {
  func.func @_film_kernel(%arg0: i32, %arg1: i32, %arg2: memref<1x8x16xf32, #tpu.memory_space<vmem>>, %arg3: memref<16x32xbf16, #tpu.memory_space<vmem>>, %arg4: memref<1x1x32xf32, #tpu.memory_space<vmem>>, %arg5: memref<1x1x32xf32, #tpu.memory_space<vmem>>, %arg6: memref<1x8x32xf32, #tpu.memory_space<vmem>>) attributes {dimension_semantics = [#tpu.dimension_semantics<parallel>, #tpu.dimension_semantics<parallel>], iteration_bounds = array<i64: 2, 1>, scalar_prefetch = 0 : i64, scratch_operands = 0 : i64, tpu.core_type = #tpu.core_type<tc>, window_params = [{transform_indices = @transform_0, window_bounds = array<i64: 1, 8, 16>}, {pipeline_mode = #tpu.pipeline_mode<synchronous>, transform_indices = @transform_1, window_bounds = array<i64: 16, 32>}, {transform_indices = @transform_2, window_bounds = array<i64: 1, 1, 32>}, {transform_indices = @transform_3, window_bounds = array<i64: 1, 1, 32>}, {transform_indices = @transform_4, window_bounds = array<i64: 1, 8, 32>}]} {
    %c0 = arith.constant 0 : index
    %c0_0 = arith.constant 0 : index
    %c0_1 = arith.constant 0 : index
    %0 = vector.load %arg2[%c0, %c0_0, %c0_1] : memref<1x8x16xf32, #tpu.memory_space<vmem>>, vector<1x8x16xf32>
    %1 = vector.shape_cast %0 : vector<1x8x16xf32> to vector<8x16xf32>
    %2 = arith.truncf %1 : vector<8x16xf32> to vector<8x16xbf16>
    %c0_2 = arith.constant 0 : index
    %c0_3 = arith.constant 0 : index
    %3 = vector.load %arg3[%c0_2, %c0_3] : memref<16x32xbf16, #tpu.memory_space<vmem>>, vector<16x32xbf16>
    %cst = arith.constant dense<0.000000e+00> : vector<8x32xf32>
    %4 = tpu.matmul %2, %3, %cst {dimension_numbers = #tpu.dot_dimension_numbers<[1], [0], [0], [1], [0, 0, 1, 1], [], []>} : vector<8x16xbf16>, vector<16x32xbf16>, vector<8x32xf32> -> vector<8x32xf32>
    %c0_4 = arith.constant 0 : index
    %c0_5 = arith.constant 0 : index
    %c0_6 = arith.constant 0 : index
    %5 = vector.load %arg4[%c0_4, %c0_5, %c0_6] : memref<1x1x32xf32, #tpu.memory_space<vmem>>, vector<1x1x32xf32>
    %6 = vector.shape_cast %5 : vector<1x1x32xf32> to vector<1x32xf32>
    %7 = vector.broadcast %6 : vector<1x32xf32> to vector<8x32xf32>
    %8 = arith.mulf %7, %4 : vector<8x32xf32>
    %c0_7 = arith.constant 0 : index
    %c0_8 = arith.constant 0 : index
    %c0_9 = arith.constant 0 : index
    %9 = vector.load %arg5[%c0_7, %c0_8, %c0_9] : memref<1x1x32xf32, #tpu.memory_space<vmem>>, vector<1x1x32xf32>
    %10 = vector.shape_cast %9 : vector<1x1x32xf32> to vector<1x32xf32>
    %11 = vector.broadcast %10 : vector<1x32xf32> to vector<8x32xf32>
    %12 = arith.addf %8, %11 : vector<8x32xf32>
    %13 = math.sin %12 : vector<8x32xf32>
    %c0_10 = arith.constant 0 : index
    %c0_11 = arith.constant 0 : index
    %c0_12 = arith.constant 0 : index
    %14 = vector.load %arg6[%c0_10, %c0_11, %c0_12] : memref<1x8x32xf32, #tpu.memory_space<vmem>>, vector<1x8x32xf32>
    %15 = vector.shape_cast %14 : vector<1x8x32xf32> to vector<8x32xf32>
    %16 = vector.shape_cast %13 : vector<8x32xf32> to vector<1x8x32xf32>
    tpu.vector_store %arg6[%c0_10, %c0_11, %c0_12], %16 {strides = array<i32>} : memref<1x8x32xf32, #tpu.memory_space<vmem>>, vector<1x8x32xf32>,
    return
  }
  func.func @transform_0(%arg0: i32, %arg1: i32) -> (i32, i32, i32) {
    %c0_i32 = arith.constant 0 : i32
    %c0_i32_0 = arith.constant 0 : i32
    return %arg0, %arg1, %c0_i32 : i32, i32, i32
  }
  func.func @transform_1(%arg0: i32, %arg1: i32) -> (i32, i32) {
    %c0_i32 = arith.constant 0 : i32
    %c0_i32_0 = arith.constant 0 : i32
    %c0_i32_1 = arith.constant 0 : i32
    return %c0_i32, %c0_i32_0 : i32, i32
  }
  func.func @transform_2(%arg0: i32, %arg1: i32) -> (i32, i32, i32) {
    %c0_i32 = arith.constant 0 : i32
    %c0_i32_0 = arith.constant 0 : i32
    %c0_i32_1 = arith.constant 0 : i32
    return %arg0, %c0_i32, %c0_i32_0 : i32, i32, i32
  }
  func.func @transform_3(%arg0: i32, %arg1: i32) -> (i32, i32, i32) {
    %c0_i32 = arith.constant 0 : i32
    %c0_i32_0 = arith.constant 0 : i32
    %c0_i32_1 = arith.constant 0 : i32
    return %arg0, %c0_i32, %c0_i32_0 : i32, i32, i32
  }
  func.func @transform_4(%arg0: i32, %arg1: i32) -> (i32, i32, i32) {
    %c0_i32 = arith.constant 0 : i32
    %c0_i32_0 = arith.constant 0 : i32
    return %arg0, %arg1, %c0_i32 : i32, i32, i32
  }
}

</mosaic_0001>

<bundles_post_ra>
// kernel: tpu_custom_call.1
= control target key start
LH: loop header
LB: loop body
LE: loop exit
PB: predicated region body
PF: predicated region fallthrough
CT: control target
= control target key end

     0   :  { %9 = vsyncpa [#allocation3], 0  ;;  %s1181_s0 = inlined_call_operand.hbm [shape: f32[2,8,16], index: 0, kind: input, shape index: {}]   ;;  %s1182_s1 = inlined_call_operand.hbm [shape: bf16[16,32], index: 1, kind: input, shape index: {}]   ;;  %s1183_s2 = inlined_call_operand.hbm [shape: f32[2,1,32], index: 2, kind: input, shape index: {}]   ;;  %s1184_s3 = inlined_call_operand.vmem [shape: f32[2,1,32], index: 3, kind: input, shape index: {}]   ;;  %s1185_s4 = inlined_call_operand.hbm [shape: f32[2,8,32], index: 4, kind: output, shape index: {}]  }
   0x1   :  { %11 = vsyncpa [#allocation3 + $0x1], 0 }
   0x2   :  { %12 = vsyncpa [#allocation6], 0 }
   0x3   :  { %13 = vsyncpa [#allocation4], 0 }
   0x4   :  { %15 = vsyncpa [#allocation4 + $0x1], 0  ;;  %s939_s15 = smov 0   ;;  %s941_s16 = smov 0  }
   0x5   :  { %s943_s17 = smov 0   ;;  %s945_s18 = smov 0  }
   0x6   :  { %s947_s19 = smov 0   ;;  %s949_s20 = smov 0  }
   0x7 LB: > { %s178_s23 = sshll.u32 %s1182_s1, 4  ;;  %s607_s24 = sadd.s32 4294967295, %s901_s20   ;;  %s901_s20 = sphi %s949_s20, %s21_s20   ;;  %s897_s19 = sphi %s947_s19, %s1197_s19   ;;  %s893_s18 = sphi %s945_s18, %s1196_s18   ;;  %s889_s17 = sphi %s943_s17, %s1195_s17   ;;  %s885_s16 = sphi %s941_s16, %s1194_s16   ;;  %s881_s15 = sphi %s939_s15, %s1193_s15   ;;  %s179_s23 = int_to_ptr.hbm [resolvable:$true] %s178_s23 }
   0x8   : > { %p609_p0 = scmp.ge.s32.totalorder %s901_s20, 1  ;;  %p976_p1 = scmp.eq.s32.totalorder %s607_s24, 0 }
   0x9   : > { %p167_p2 = scmp.lt.s32.totalorder %s901_s20, 3  ;;  %s903_s27 = smov [#allocation5]  }
   0xa   : > { %s180_s28 = sshll.u32 %s903_s27, 4  ;;  %p611_p5 = scmp.ge.s32.totalorder %s901_s20, 2  ;;  %s181_s28 = int_to_ptr.vmem [resolvable:$true] %s180_s28 }
   0xb   : > { %p981_p3 = pnand %p609_p0, %p167_p2  ;;  %s904_s29 = smov 64  }
   0xc   : > { %s905_s30 = smov 4   ;;  %s608_s5 = sadd.s32 4294967294, %s901_s20  }
   0xd   : > { %p641_p4 = pneg %p981_p3  ;;  %p55_p7 = scmp.ne.s32.totalorder %s885_s16, %s881_s15 }
   0xe   : > { %p160_p8 = scmp.eq.s32.totalorder %s608_s5, 1  ;;  %s192_s8 = scalar_lea.hbm %s1183_s2, %s893_s18 }
   0xf   : > { %p642_p6 = pnand %p641_p4, %p976_p1  ;;  %p1002_p9 = por %p976_p1, %p55_p7 }
  0x10   : > { %p1006_p10 = por %p160_p8, %p55_p7  ;;  %s194_s11 = sshll.u32 %s192_s8, 4  ;;  %s195_s11 = int_to_ptr.hbm [resolvable:$true] %s194_s11 }
  0x11   : > { %644 = dma.hbm_to_vmem [thread:$0]  (!%p642_p6), %s179_s23, 128, %s181_s28, [#allocation6], %s904_s29, %s904_s29, %s905_s30  }
  0x12   : > { %s906_s12 = smov [#allocation7]   ;;  %p1015_p11 = pnand %p641_p4, %p1002_p9 }
  0x13   : > { %s196_s13 = sshll.u32 %s906_s12, 4  ;;  %s751_s21 = sshra.s32 %s195_s11, 4  ;;  %s197_s13 = int_to_ptr.vmem [resolvable:$true] %s196_s13  ;;  %s752_s21 = int_to_ptr.hbm [resolvable:$true] %s751_s21 }
  0x14   : > { %s753_s22 = scalar_lea.hbm %s752_s21, 1  ;;  %p755_p13 = pneg %p1015_p11 }
  0x15   : > { %p754_p12 = scmp.ne.s32.totalorder %s752_s21, %s753_s22  ;;  %s758_s28 = scalar_lea.hbm %s1183_s2, 2 }
  0x16   : > { %p759_p4 = scmp.lt.s32.totalorder %s752_s21, %s1183_s2  ;;  %p760_p6 = scmp.lt.s32.totalorder %s758_s28, %s753_s22 }
  0x17   : > { %p756_p0 = pnand %p755_p13, %p754_p12 }
  0x18   : > { %p761_p7 = por %p760_p6, %p759_p4 }
  0x19   : > { %p757_p2 = pneg %p756_p0 }
  0x1b   : > { %p762_p8 = pnand %p761_p7, %p757_p2 }
  0x1d   : > { %765 = shalt.err (!%p762_p8)
}
  0x1e   : > { %647 = dma.hbm_to_vmem [thread:$0]  (!%p1015_p11), %s195_s11, 16, %s197_s13, [#allocation6]  }
  0x1f   : > { %s33_s5 = sadd.s32 1, %s897_s19  ;;  %s42_s6 = sadd.s32 1, %s889_s17 }
  0x20   : > { %p35_p12 = scmp.ge.s32.totalorder %s33_s5, 2  ;;  %p49_p13 = scmp.ne.s32.totalorder %s889_s17, %s885_s16 }
  0x21   : > { %p50_p0 = scmp.eq.s32.totalorder %s901_s20, 0  ;;  %p154_p2 = scmp.eq.s32.totalorder %s607_s24, 1 }
  0x22   : > { %s1199_s5 = smov (%p35_p12, %s33_s5), 0  ;;  %p657_p11 = scmp.lt.s32.totalorder %s901_s20, 2 }
  0x23   : > { %p1038_p4 = por %p50_p0, %p49_p13  ;;  %p1042_p6 = por %p154_p2, %p49_p13 }
  0x24   : > { %s37_s11 = ssub.s32 %s897_s19, %s1199_s5  ;;  %s213_s12 = sand.u32 1, %s889_s17  }
  0x25   : > { %p40_p7 = scmp.eq.s32.totalorder %s37_s11, 0  ;;  %s612_s13 = sshll.u32 %s213_s12, 3 }
  0x26   : > { %s613_s24 = sshll.u32 %s897_s19, 3  ;;  %s217_s27 = scalar_lea.vmem [#allocation2], %s612_s13 }
  0x27   : > { %s1051_s14 = scalar_select %p40_p7, %s889_s17, %s42_s6  }
  0x28   : > { %s222_s23 = scalar_lea.hbm %s1181_s0, %s613_s24  ;;  %s226_s28 = sshll.u32 %s217_s27, 4  ;;  %s227_s28 = int_to_ptr.vmem [resolvable:$true] %s226_s28 }
  0x29   : > { %s224_s29 = sshll.u32 %s222_s23, 4  ;;  %p649_p8 = pnand %p657_p11, %p1038_p4  ;;  %s225_s29 = int_to_ptr.hbm [resolvable:$true] %s224_s29 }
  0x2a   : > { %s214_s30 = scalar_lea.sflag [#allocation3], %s213_s12  ;;  %235 = sbr.rel (%p981_p3) target bundleno = 285 (0x11d), region = 36 }
  0x2b   : > { %651 = dma.hbm_to_vmem [thread:$0]  (!%p649_p8), %s225_s29, 128, %s227_s28, %s214_s30  }
  0x2c   : > { %s1062_s6 = sand.u32 (!%p981_p3), 1, %s885_s16  }
  0x2d   : > { %s615_s11 = sshll.u32 (!%p981_p3), %s1062_s6, 3  ;;  %s238_s13 = scalar_lea.sflag (!%p981_p3), [#allocation3], %s1062_s6 }
  0x2e   : > { %s241_s24 = scalar_lea.vmem (!%p981_p3), [#allocation2], %s615_s11 }
  0x2f   : > { %864 = dma.done.wait (%p1002_p9), %s238_s13, 128  }
  0x30   : > { %866 = vsyncadd (%p1002_p9), %s238_s13, 4294967168 }
  0x31   : > { %868 = dma.done.wait (%p976_p1), [#allocation6], 128  }
  0x32   : > { %870 = vsyncadd (%p976_p1), [#allocation6], 4294967168 }
  0x33   : > { %872 = dma.done.wait (%p1002_p9), [#allocation6], 16  }
  0x34   : > { %874 = vsyncadd (%p1002_p9), [#allocation6], 4294967280  ;;  %p280_p3 = scmp.lt.s32.totalorder %s893_s18, 1  ;;  %v630_v0 = vld [vmem:[#allocation5] sm:$0xff]  ;;  %v284_v1 = vld [vmem:[%s241_s24] sm:$0xff]  ;;  %vm294_vm0 = vcmask 130048  }
  0x35   : > { %v285_v2 = vpack.c.bf16 %v284_v1, %v284_v1  ;;  %305 = vmatpush.bf16.msra.mxu0 %v630_v0  ;;  %v719_v3 = vld [vmem:[#allocation7] ss:$0 sm:$0xff]  ;;  %v907_v20 = vmov 683565275   ;;  %v908_v22 = vmov 2475754826  }
  0x36   : > { %s281_s26 = scalar_select %p280_p3, %s893_s18, 1  ;;  %v909_v25 = vmov 2131351028   ;;  %v910_v28 = vmov 2102212464  }
  0x37   : > { %v911_v31 = vmov 920167782   ;;  %v912_v34 = vmov 1326507024   ;;  %s627_s25 = sshll.u32 %s893_s18, 3  ;;  %s279_s27 = scalar_lea.vmem [#allocation8], %s615_s11 }
  0x38   : > { %s282_s21 = scalar_lea.vmem %s1184_s3, %s281_s26  ;;  %622 = vmatmul.msk.bf16.vlgmr.msra.gmra.mxu0 %vm294_vm0, %v285_v2  ;;  %s490_s23 = scalar_lea.hbm %s1185_s4, %s627_s25 }
  0x39   : > { %v720_v4 = vld [vmem:[%s282_s21] ss:$0 sm:$0xff]  ;;  %s492_s28 = sshll.u32 %s279_s27, 4  ;;  %s494_s29 = sshll.u32 %s490_s23, 4  ;;  %s493_s28 = int_to_ptr.vmem [resolvable:$true] %s492_s28  ;;  %s495_s29 = int_to_ptr.hbm [resolvable:$true] %s494_s29 }
  0x3a   : > { %s479_s18 = scalar_lea.sflag [#allocation4], %s1062_s6  ;;  %s825_s30 = sshra.s32 %s495_s29, 4  ;;  %s826_s30 = int_to_ptr.hbm [resolvable:$true] %s825_s30 }
  0x3b   : > { %s827_s11 = scalar_lea.hbm %s826_s30, 8  ;;  %s831_s26 = scalar_lea.hbm %s1185_s4, 16 }
  0x3c   : > { %p828_p1 = scmp.ne.s32.totalorder %s826_s30, %s827_s11  ;;  %p832_p13 = scmp.lt.s32.totalorder %s826_s30, %s1185_s4 }
  0x3d   : > { %p833_p0 = scmp.lt.s32.totalorder %s831_s26, %s827_s11 }
  0x3e   : > { %p829_p9 = pnand %p828_p1, %p1042_p6 }
  0x3f   : > { %p834_p2 = por %p833_p0, %p832_p13 }
  0x40   : > { %p830_p12 = pneg %p829_p9 }
  0x42   : > { %p835_p4 = pnand %p834_p2, %p830_p12 }
  0xb5   : > { %v307_v5 = vpop.f32.mrf.mxu0 }
  0xb6   : > { %v315_v6 = vmul.f32 %v719_v3, %v307_v5 }
  0xb8   : > { %v1085_v7 = vadd.f32 %v720_v4, %v315_v6  ;;  %v913_v4 = vmov 0  }
  0xba   : > { %v324_v8 = vand.u32 2139095040, %v1085_v7  ;;  %v321_v12 = vand.u32 2147483647, %v1085_v7  ;;  %vm323_vm13 = vcmp.lt.s32.totalorder %v1085_v7, 0 }
  0xbc   : > { %v325_v9 = vshrl.u32 %v324_v8, 23  ;;  %v328_v14 = vand.u32 8388607, %v321_v12  ;;  %vm322_vm14 = vcmp.le.f32.partialorder %v321_v12, 0.7853982 }
  0xbd   : > { %v309_v10 = vpop.f32.mrf.mxu0 }
  0xbe   : > { %v623_v11 = vadd.s32 4294967169, %v325_v9  ;;  %v329_v18 = vor.u32 8388608, %v328_v14 }
  0xc0   : > { %v331_v13 = vadd.s32 1, %v623_v11  ;;  %v1102_v41 = vshll.u32 %v329_v18, 8 }
  0xc2   : > { %vm332_vm1 = vcmp.gt.s32.totalorder %v331_v13, 0  ;;  %v370_v50 = vand.u32 65535, %v1102_v41  ;;  %v371_v51 = vshrl.u32 %v1102_v41, 16 }
  0xc3   : > { %v333_v15 = vsel %vm332_vm1, %v331_v13, 0 }
  0xc4   : > { %v335_v16 = vand.u32 31, %v333_v15  ;;  %v1093_v19 = vshrl.u32 %v333_v15, 5 }
  0xc6   : > { %v1091_v17 = vsub.s32 32, %v335_v16  ;;  %v338_v21 = vshll.u32 %v907_v20, %v335_v16  ;;  %v341_v23 = vshll.u32 %v908_v22, %v335_v16  ;;  %v344_v27 = vshll.u32 %v909_v25, %v335_v16 }
  0xc7   : > { %v347_v30 = vshll.u32 %v910_v28, %v335_v16  ;;  %v350_v33 = vshll.u32 %v911_v31, %v335_v16  ;;  %vm353_vm2 = vcmp.lt.s32.totalorder %v1093_v19, 1  ;;  %vm356_vm3 = vcmp.lt.s32.totalorder %v1093_v19, 4 }
  0xc8   : > { %v339_v24 = vshrl.u32 %v908_v22, %v1091_v17  ;;  %v342_v26 = vshrl.u32 %v909_v25, %v1091_v17  ;;  %v345_v29 = vshrl.u32 %v910_v28, %v1091_v17  ;;  %v348_v32 = vshrl.u32 %v911_v31, %v1091_v17 }
  0xc9   : > { %v351_v35 = vshrl.u32 %v912_v34, %v1091_v17  ;;  %vm355_vm4 = vcmp.lt.s32.totalorder %v1093_v19, 3  ;;  %vm354_vm5 = vcmp.lt.s32.totalorder %v1093_v19, 2  ;;  %v337_v15 = vshrl.u32 %v907_v20, %v1091_v17 }
  0xca   : > { %v340_v36 = vor.u32 %v339_v24, %v338_v21  ;;  %v343_v37 = vor.u32 %v342_v26, %v341_v23  ;;  %v346_v38 = vor.u32 %v345_v29, %v344_v27  ;;  %v349_v39 = vor.u32 %v348_v32, %v347_v30 }
  0xcb   : > { %v352_v40 = vor.u32 %v351_v35, %v350_v33 }
  0xcc   : > { %v361_v42 = vsel %vm353_vm2, %v340_v36, %v343_v37  ;;  %v365_v43 = vsel %vm353_vm2, %v343_v37, %v346_v38  ;;  %v362_v44 = vsel %vm356_vm3, %v349_v39, 920167782  ;;  %v358_v11 = vsel %vm356_vm3, %v346_v38, 2102212464 }
  0xcd   : > { %v366_v45 = vsel %vm356_vm3, %v352_v40, 1326507024  ;;  %v363_v46 = vsel %vm355_vm4, %v346_v38, %v362_v44  ;;  %v357_v24 = vsel %vm353_vm2, %v337_v15, %v340_v36  ;;  %v359_v25 = vsel %vm355_vm4, %v343_v37, %v358_v11 }
  0xce   : > { %v367_v47 = vsel %vm355_vm4, %v349_v39, %v366_v45  ;;  %v364_v48 = vsel %vm354_vm5, %v361_v42, %v363_v46  ;;  %v360_v17 = vsel %vm354_vm5, %v357_v24, %v359_v25  ;;  %vm476_vm2 = vcmask 261120  }
  0xcf   : > { %v368_v49 = vsel %vm354_vm5, %v365_v43, %v367_v47  ;;  %v394_v54 = vand.u32 65535, %v364_v48  ;;  %v395_v55 = vshrl.u32 %v364_v48, 16  ;;  %v414_v33 = vmul.u32 %v1102_v41, %v360_v17 }
  0xd0   : > { %v372_v52 = vand.u32 65535, %v368_v49  ;;  %v373_v53 = vshrl.u32 %v368_v49, 16  ;;  %vm464_vm3 = vweird.f32 %v1085_v7 }
  0xd1   : > { %v397_v58 = vmul.u32 %v395_v55, %v370_v50  ;;  %v398_v59 = vmul.u32 %v394_v54, %v371_v51  ;;  %v396_v63 = vmul.u32 %v394_v54, %v370_v50  ;;  %v399_v3 = vmul.u32 %v395_v55, %v371_v51 }
  0xd2   : > { %v375_v56 = vmul.u32 %v373_v53, %v370_v50  ;;  %v376_v57 = vmul.u32 %v372_v52, %v371_v51  ;;  %v374_v60 = vmul.u32 %v372_v52, %v370_v50  ;;  %v377_v62 = vmul.u32 %v373_v53, %v371_v51 }
  0xd3   : > { %v400_v0 = vshll.u32 %v397_v58, 16  ;;  %v402_v6 = vshll.u32 %v398_v59, 16  ;;  %v401_v22 = vshrl.u32 %v397_v58, 16  ;;  %v403_v28 = vshrl.u32 %v398_v59, 16 }
  0xd4   : > { %v378_v61 = vshll.u32 %v375_v56, 16  ;;  %v380_v1 = vshll.u32 %v376_v57, 16  ;;  %v379_v16 = vshrl.u32 %v375_v56, 16  ;;  %v381_v26 = vshrl.u32 %v376_v57, 16 }
  0xd5   : > { %vm404_vm7 = vc.u32 %v396_v63, %v400_v0  ;;  %v406_v8 = vadd.s32 %v400_v0, %v396_v63 }
  0xd6   : > { %vm382_vm6 = vc.u32 %v374_v60, %v378_v61  ;;  %v384_v2 = vadd.s32 %v378_v61, %v374_v60  ;;  %v405_v10 = vsel %vm404_vm7, 1, %v913_v4 }
  0xd7   : > { %v383_v5 = vsel %vm382_vm6, 1, %v913_v4  ;;  %v407_v14 = vadd.s32 %v405_v10, %v399_v3  ;;  %vm408_vm9 = vc.u32 %v406_v8, %v402_v6  ;;  %v410_v31 = vadd.s32 %v406_v8, %v402_v6 }
  0xd8   : > { %v385_v9 = vadd.s32 %v383_v5, %v377_v62  ;;  %vm386_vm8 = vc.u32 %v384_v2, %v380_v1  ;;  %v409_v21 = vsel %vm408_vm9, 1, %v913_v4 }
  0xd9   : > { %v387_v13 = vsel %vm386_vm8, 1, %v913_v4  ;;  %v411_v23 = vadd.s32 %v409_v21, %v407_v14 }
  0xda   : > { %v389_v18 = vadd.s32 %v387_v13, %v385_v9 }
  0xdb   : > { %v412_v29 = vadd.s32 %v411_v23, %v401_v22 }
  0xdc   : > { %v390_v27 = vadd.s32 %v389_v18, %v379_v16 }
  0xdd   : > { %v413_v20 = vadd.s32 %v412_v29, %v403_v28 }
  0xde   : > { %v391_v30 = vadd.s32 %v390_v27, %v381_v26 }
  0xdf   : > { %v417_v32 = vadd.s32 1, %v413_v20 }
  0xe0   : > { %vm416_vm10 = vc.u32 %v391_v30, %v410_v31  ;;  %v415_v19 = vadd.s32 %v410_v31, %v391_v30 }
  0xe1   : > { %v418_v34 = vsel %vm416_vm10, %v417_v32, %v413_v20 }
  0xe2   : > { %v419_v35 = vadd.s32 %v418_v34, %v414_v33 }
  0xe4   : > { %v420_v36 = vadd.s32 536870912, %v419_v35 }
  0xe6   : > { %v421_v38 = vshrl.u32 %v420_v36, 30 }
  0xe8   : > { %v422_v39 = vshll.u32 %v421_v38, 30  ;;  %v445_v58 = vsub.s32 4, %v421_v38 }
  0xea   : > { %v423_v37 = vsub.s32 %v419_v35, %v422_v39  ;;  %v446_v63 = vsel %vm323_vm13, %v445_v58, %v421_v38 }
  0xeb   : > { %v448_v2 = vsel %vm322_vm14, 0, %v446_v63 }
  0xec   : > { %vm424_vm11 = vcmp.lt.s32.totalorder %v423_v37, 0  ;;  %v425_v40 = vsub.s32 0, %v423_v37  ;;  %v465_v8 = vadd.s32 3, %v448_v2 }
  0xee   : > { %v426_v42 = vsel %vm424_vm11, %v425_v40, %v423_v37  ;;  %v466_v13 = vand.u32 3, %v465_v8 }
  0xef   : > { %v427_v43 = vclz %v426_v42 }
  0xf0   : > { %vm468_vm15 = vcmp.eq.s32.totalorder %v466_v13, 0  ;;  %vm471_vm0 = vcmp.eq.s32.totalorder %v466_v13, 2  ;;  %vm467_vm1 = vcmp.lt.s32.totalorder %v466_v13, 2 }
  0xf1   : > { %v624_v44 = vadd.s32 4294967294, %v427_v43 }
  0xf3   : > { %vm625_vm12 = vcmp.lt.s32.totalorder %v624_v44, 0 }
  0xf4   : > { %v430_v45 = vsel %vm625_vm12, 0, %v624_v44 }
  0xf5   : > { %v431_v46 = vsub.s32 32, %v430_v45  ;;  %v435_v47 = vsub.s32 4294967266, %v430_v45  ;;  %v432_v48 = vshll.u32 %v423_v37, %v430_v45 }
  0xf7   : > { %v433_v49 = vshrl.u32 %v415_v19, %v431_v46  ;;  %v436_v50 = vadd.s32 127, %v435_v47 }
  0xf9   : > { %v434_v41 = vor.u32 %v433_v49, %v432_v48  ;;  %v437_v51 = vshll.u32 %v436_v50, 23 }
  0xfb   : > { %v438_v52 = vor.u32 4788187, %v437_v51  ;;  %v441_v54 = vcvt.s32.f32 %v434_v41 }
  0xfd   : > { %v439_v53 = vand.u32 2147483647, %v438_v52 }
  0xff   : > { %v442_v55 = vmul.f32 %v441_v54, %v439_v53 }
 0x101   : > { %v443_v56 = vxor.u32 2147483648, %v442_v55 }
 0x103   : > { %v444_v57 = vsel %vm323_vm13, %v443_v56, %v442_v55 }
 0x104   : > { %v447_v59 = vsel %vm322_vm14, %v1085_v7, %v444_v57 }
 0x105   : > { %v449_v60 = vmul.f32 %v447_v59, %v447_v59 }
 0x107   : > { %v457_v61 = vmul.f32 -0.00019511016, %v449_v60  ;;  %v450_v62 = vmul.f32 -0.001358992, %v449_v60 }
 0x109   : > { %v458_v0 = vadd.f32 0.008332121, %v457_v61  ;;  %v451_v1 = vadd.f32 0.041655596, %v450_v62 }
 0x10b   : > { %v459_v3 = vmul.f32 %v458_v0, %v449_v60  ;;  %v452_v4 = vmul.f32 %v451_v1, %v449_v60 }
 0x10d   : > { %v460_v5 = vadd.f32 -0.16666654, %v459_v3  ;;  %v453_v6 = vadd.f32 -0.4999988, %v452_v4 }
 0x10f   : > { %v461_v9 = vmul.f32 %v460_v5, %v449_v60  ;;  %v454_v12 = vmul.f32 %v453_v6, %v449_v60 }
 0x111   : > { %v462_v10 = vadd.f32 1.0, %v461_v9  ;;  %v455_v11 = vadd.f32 1.0, %v454_v12 }
 0x113   : > { %v463_v14 = vmul.f32 %v462_v10, %v447_v59  ;;  %v472_v15 = vxor.u32 2147483648, %v455_v11 }
 0x115   : > { %v469_v16 = vxor.u32 2147483648, %v463_v14  ;;  %v473_v21 = vsel %vm471_vm0, %v472_v15, %v463_v14 }
 0x117   : > { %v470_v18 = vsel %vm468_vm15, %v455_v11, %v469_v16 }
 0x118   : > { %v474_v22 = vsel %vm467_vm1, %v470_v18, %v473_v21 }
 0x119   : > { %v475_v23 = vsel %vm464_vm3, nan, %v474_v22 }
 0x11a   : > { %477 = vst.msk [vmem:[%s279_s27] sm:$0xff] %vm476_vm2, %v475_v23 }
 0x11b   : > { %838 = shalt.err (!%p835_p4)
}
 0x11c   : > { %639 = dma.vmem_to_hbm [thread:$0]  (%p1042_p6), %s493_s28, 128, %s495_s29, %s479_s18  }
 0x11d PF: > { %s506_s6 = sand.u32 1, %s881_s15   ;;  %p653_p11 = pnand %p611_p5, %p1006_p10 }
 0x11e   : > { %s507_s21 = scalar_lea.sflag [#allocation4], %s506_s6 }
 0x11f   : > { %p654_p7 = pneg %p653_p11 }
 0x121   : > { %876 = dma.done.wait (%p654_p7), %s507_s21, 128  }
 0x122   : > { %878 = vsyncadd (%p654_p7), %s507_s21, 4294967168  ;;  %s21_s20 = sadd.s32 1, %s901_s20   ;;  %s1193_s15 = smov %s885_s16 }
 0x123   : > { %p18_p8 = scmp.ge.s32.totalorder %s21_s20, 4   ;;  %s1194_s16 = smov %s889_s17 }
 0x124   : > { %s1195_s17 = smov %s1051_s14  ;;  %s1196_s18 = smov %s897_s19 }
 0x125   : > { %s1197_s19 = smov %s1199_s5  ;;  %20 = sbr.rel (!%p18_p8) target bundleno = 7 (0x7), region = 93 }
 0x12a   :  { %513 = vsyncpa [#allocation3], 1 }
 0x12b   :  { %515 = vsyncpa [#allocation3 + $0x1], 1 }
 0x12c   :  { %516 = vsyncpa [#allocation6], 1 }
 0x12d   :  { %517 = vsyncpa [#allocation4], 1 }
 0x12e   :  { %519 = vsyncpa [#allocation4 + $0x1], 1 }

// kernel: tpu_custom_call.1
= control target key start
LH: loop header
LB: loop body
LE: loop exit
PB: predicated region body
PF: predicated region fallthrough
CT: control target
= control target key end

     0   :  { %s1184_s0 = inlined_call_operand.hbm [shape: f32[2,8,16], index: 0, kind: input, shape index: {}]   ;;  %s1185_s1 = inlined_call_operand.hbm [shape: bf16[16,32], index: 1, kind: input, shape index: {}]   ;;  %s1186_s2 = inlined_call_operand.hbm [shape: f32[2,1,32], index: 2, kind: input, shape index: {}]   ;;  %s1187_s3 = inlined_call_operand.vmem [shape: f32[2,1,32], index: 3, kind: input, shape index: {}]   ;;  %s1188_s4 = inlined_call_operand.hbm [shape: f32[2,8,32], index: 4, kind: output, shape index: {}]  }
   0x1   :  { %1189 = sst [smem:[#allocation13_spill]] %s1184_s0 }
   0x2   :  { %9 = vsyncpa [#allocation3], 0 }
   0x3   :  { %11 = vsyncpa [#allocation3 + $0x1], 0 }
   0x4   :  { %12 = vsyncpa [#allocation6], 0 }
   0x5   :  { %13 = vsyncpa [#allocation4], 0 }
   0x6   :  { %15 = vsyncpa [#allocation4 + $0x1], 0  ;;  %s952_s15 = smov 0   ;;  %s954_s16 = smov 0  }
   0x7   :  { %s956_s17 = smov 0   ;;  %s958_s18 = smov 0  }
   0x8   :  { %s960_s19 = smov 0   ;;  %s962_s20 = smov 0  }
   0x9 LB: > { %s983_s21 = sadd.s32 4294967295, %s915_s20   ;;  %s623_s22 = sadd.s32 4294967294, %s915_s20   ;;  %s915_s20 = sphi %s962_s20, %s21_s20   ;;  %s911_s19 = sphi %s960_s19, %s1201_s19   ;;  %s907_s18 = sphi %s958_s18, %s1200_s18   ;;  %s903_s17 = sphi %s956_s17, %s1199_s17   ;;  %s899_s16 = sphi %s954_s16, %s1198_s16   ;;  %s895_s15 = sphi %s952_s15, %s1197_s15  }
   0xa   : > { %s33_s23 = sadd.s32 1, %s911_s19  ;;  %s42_s24 = sadd.s32 1, %s903_s17 }
   0xb   : > { %p35_p0 = scmp.ge.s32.totalorder %s33_s23, 2  ;;  %p49_p1 = scmp.ne.s32.totalorder %s903_s17, %s899_s16 }
   0xc   : > { %p50_p2 = scmp.eq.s32.totalorder %s915_s20, 0  ;;  %p55_p3 = scmp.ne.s32.totalorder %s899_s16, %s895_s15 }
   0xd   : > { %s1203_s23 = smov (%p35_p0, %s33_s23), 0  ;;  %p154_p5 = scmp.eq.s32.totalorder %s983_s21, 1 }
   0xe   : > { %p995_p4 = por %p50_p2, %p49_p1  ;;  %s37_s26 = ssub.s32 %s911_s19, %s1203_s23 }
   0xf   : > { %p160_p6 = scmp.eq.s32.totalorder %s623_s22, 1  ;;  %p40_p7 = scmp.eq.s32.totalorder %s37_s26, 0 }
  0x10   : > { %p1002_p8 = por %p154_p5, %p49_p1  ;;  %p626_p10 = scmp.ge.s32.totalorder %s915_s20, 2 }
  0x11   : > { %p1009_p9 = por %p160_p6, %p55_p3  ;;  %p672_p11 = scmp.lt.s32.totalorder %s915_s20, 2 }
  0x12   : > { %s1014_s29 = scalar_select %p40_p7, %s903_s17, %s42_s24  }
  0x13   : > { %s194_s30 = sand.u32 1, %s915_s20   ;;  %s196_s5 = sand.u32 1, %s903_s17  }
  0x14   : > { %s627_s6 = sshll.u32 %s196_s5, 3  ;;  %s628_s7 = sshll.u32 %s911_s19, 3 }
  0x15   : > { %s1193_s0 = sld [smem:[#allocation13_spill]]  ;;  %s198_s11 = scalar_lea.vmem [#allocation2], %s627_s6 }
  0x16   : > { %s207_s12 = sshll.u32 %s198_s11, 4  ;;  %p1026_p12 = pnand %p672_p11, %p995_p4  ;;  %s208_s12 = int_to_ptr.vmem [resolvable:$true] %s207_s12 }
  0x17   : > { %p56_p13 = scmp.eq.s32.totalorder %s983_s21, 0  ;;  %s195_s22 = scalar_lea.sflag [#allocation3], %s194_s30 }
  0x18   : > { %p624_p1 = scmp.ge.s32.totalorder %s915_s20, 1  ;;  %p167_p2 = scmp.lt.s32.totalorder %s915_s20, 3 }
  0x19   : > { %p1038_p0 = por %p56_p13, %p55_p3  ;;  %s178_s6 = sshll.u32 %s1185_s1, 4  ;;  %s179_s6 = int_to_ptr.hbm [resolvable:$true] %s178_s6 }
  0x1a   : > { %p1047_p4 = pnand %p624_p1, %p167_p2  ;;  %s917_s30 = smov [#allocation5]  }
  0x1b   : > { %s203_s10 = scalar_lea.hbm %s1193_s0, %s628_s7  ;;  %s180_s8 = sshll.u32 %s917_s30, 4  ;;  %s181_s8 = int_to_ptr.vmem [resolvable:$true] %s180_s8 }
  0x1c   : > { %s205_s13 = sshll.u32 %s203_s10, 4  ;;  %p656_p3 = pneg %p1047_p4  ;;  %s206_s13 = int_to_ptr.hbm [resolvable:$true] %s205_s13 }
  0x1d   : > { %663 = dma.hbm_to_vmem [thread:$0]  (!%p1026_p12), %s206_s13, 128, %s208_s12, %s195_s22  }
  0x1e   : > { %s220_s11 = scalar_lea.hbm %s1186_s2, %s911_s19  ;;  %p657_p5 = pnand %p656_p3, %p56_p13 }
  0x1f   : > { %s222_s12 = sshll.u32 %s220_s11, 4  ;;  %s217_s13 = scalar_lea.vmem [#allocation7], %s196_s5  ;;  %s223_s12 = int_to_ptr.hbm [resolvable:$true] %s222_s12 }
  0x20   : > { %s224_s26 = sshll.u32 %s217_s13, 4  ;;  %s918_s25 = smov 64   ;;  %s225_s26 = int_to_ptr.vmem [resolvable:$true] %s224_s26 }
  0x21   : > { %s919_s0 = smov 4   ;;  %239 = sbr.rel (%p1047_p4) target bundleno = 277 (0x115), region = 36 }
  0x22   : > { %659 = dma.hbm_to_vmem [thread:$0]  (!%p657_p5), %s179_s6, 128, %s181_s8, [#allocation6], %s918_s25, %s918_s25, %s919_s0  }
  0x23   : > { %666 = dma.hbm_to_vmem [thread:$0]  (!%p1026_p12), %s223_s12, 16, %s225_s26, %s195_s22  }
  0x24   : > { %s241_s30 = sand.u32 (!%p1047_p4), 1, %s983_s21   ;;  %s1065_s9 = sand.u32 (!%p1047_p4), 1, %s899_s16  }
  0x25   : > { %s630_s10 = sshll.u32 (!%p1047_p4), %s1065_s9, 3  ;;  %s242_s5 = scalar_lea.sflag (!%p1047_p4), [#allocation3], %s241_s30 }
  0x26   : > { %s245_s11 = scalar_lea.vmem [#allocation2], %s630_s10 }
  0x27   : > { %878 = dma.done.wait (%p1038_p0), %s242_s5, 128  }
  0x28   : > { %880 = vsyncadd (%p1038_p0), %s242_s5, 4294967168 }
  0x29   : > { %882 = dma.done.wait (%p56_p13), [#allocation6], 128  }
  0x2a   : > { %884 = vsyncadd (%p56_p13), [#allocation6], 4294967168  ;;  %s259_s0 = scalar_lea.vmem [#allocation7], %s1065_s9 }
  0x2b   : > { %886 = dma.done.wait (%p1038_p0), %s242_s5, 16  }
  0x2c   : > { %888 = vsyncadd (%p1038_p0), %s242_s5, 4294967280  ;;  %p292_p6 = scmp.lt.s32.totalorder %s907_s18, 1  ;;  %v645_v0 = vld [vmem:[#allocation5] sm:$0xff]  ;;  %v296_v1 = vld [vmem:[%s245_s11] sm:$0xff]  ;;  %vm306_vm0 = vcmask 130048   ;;  %s642_s21 = sshll.u32 %s907_s18, 3 }
  0x2d   : > { %v297_v2 = vpack.c.bf16 %v296_v1, %v296_v1  ;;  %317 = vmatpush.bf16.msra.mxu0 %v645_v0  ;;  %v733_v3 = vld [vmem:[%s259_s0] ss:$0 sm:$0xff]  ;;  %v920_v20 = vmov 683565275   ;;  %v921_v22 = vmov 2475754826   ;;  %s502_s12 = scalar_lea.hbm %s1188_s4, %s642_s21 }
  0x2e   : > { %s293_s14 = scalar_select %p292_p6, %s907_s18, 1  ;;  %v922_v25 = vmov 2131351028   ;;  %v923_v28 = vmov 2102212464  }
  0x2f   : > { %v924_v31 = vmov 920167782   ;;  %v925_v34 = vmov 1326507024   ;;  %s291_s13 = scalar_lea.vmem [#allocation8], %s630_s10  ;;  %s506_s25 = sshll.u32 %s502_s12, 4  ;;  %s507_s25 = int_to_ptr.hbm [resolvable:$true] %s506_s25 }
  0x30   : > { %s294_s7 = scalar_lea.vmem %s1187_s3, %s293_s14  ;;  %637 = vmatmul.msk.bf16.vlgmr.msra.gmra.mxu0 %vm306_vm0, %v297_v2  ;;  %s504_s26 = sshll.u32 %s291_s13, 4  ;;  %s505_s26 = int_to_ptr.vmem [resolvable:$true] %s504_s26 }
  0x31   : > { %v734_v4 = vld [vmem:[%s294_s7] ss:$0 sm:$0xff]  ;;  %s491_s18 = scalar_lea.sflag [#allocation4], %s1065_s9  ;;  %s839_s30 = sshra.s32 %s507_s25, 4  ;;  %s840_s30 = int_to_ptr.hbm [resolvable:$true] %s839_s30 }
  0x32   : > { %s841_s10 = scalar_lea.hbm %s840_s30, 8  ;;  %s845_s0 = scalar_lea.hbm %s1188_s4, 16 }
  0x33   : > { %p842_p7 = scmp.ne.s32.totalorder %s840_s30, %s841_s10  ;;  %p846_p13 = scmp.lt.s32.totalorder %s840_s30, %s1188_s4 }
  0x34   : > { %p847_p0 = scmp.lt.s32.totalorder %s845_s0, %s841_s10 }
  0x35   : > { %p843_p11 = pnand %p842_p7, %p1002_p8 }
  0x36   : > { %p848_p1 = por %p847_p0, %p846_p13 }
  0x37   : > { %p844_p12 = pneg %p843_p11 }
  0x39   : > { %p849_p2 = pnand %p848_p1, %p844_p12 }
  0xad   : > { %v319_v5 = vpop.f32.mrf.mxu0 }
  0xae   : > { %v327_v6 = vmul.f32 %v733_v3, %v319_v5 }
  0xb0   : > { %v1088_v7 = vadd.f32 %v734_v4, %v327_v6  ;;  %v926_v4 = vmov 0  }
  0xb2   : > { %v336_v8 = vand.u32 2139095040, %v1088_v7  ;;  %v333_v12 = vand.u32 2147483647, %v1088_v7  ;;  %vm335_vm13 = vcmp.lt.s32.totalorder %v1088_v7, 0 }
  0xb4   : > { %v337_v9 = vshrl.u32 %v336_v8, 23  ;;  %v340_v14 = vand.u32 8388607, %v333_v12  ;;  %vm334_vm14 = vcmp.le.f32.partialorder %v333_v12, 0.7853982 }
  0xb5   : > { %v321_v10 = vpop.f32.mrf.mxu0 }
  0xb6   : > { %v638_v11 = vadd.s32 4294967169, %v337_v9  ;;  %v341_v18 = vor.u32 8388608, %v340_v14 }
  0xb8   : > { %v343_v13 = vadd.s32 1, %v638_v11  ;;  %v1105_v41 = vshll.u32 %v341_v18, 8 }
  0xba   : > { %vm344_vm1 = vcmp.gt.s32.totalorder %v343_v13, 0  ;;  %v382_v50 = vand.u32 65535, %v1105_v41  ;;  %v383_v51 = vshrl.u32 %v1105_v41, 16 }
  0xbb   : > { %v345_v15 = vsel %vm344_vm1, %v343_v13, 0 }
  0xbc   : > { %v347_v16 = vand.u32 31, %v345_v15  ;;  %v1096_v19 = vshrl.u32 %v345_v15, 5 }
  0xbe   : > { %v1094_v17 = vsub.s32 32, %v347_v16  ;;  %v350_v21 = vshll.u32 %v920_v20, %v347_v16  ;;  %v353_v23 = vshll.u32 %v921_v22, %v347_v16  ;;  %v356_v27 = vshll.u32 %v922_v25, %v347_v16 }
  0xbf   : > { %v359_v30 = vshll.u32 %v923_v28, %v347_v16  ;;  %v362_v33 = vshll.u32 %v924_v31, %v347_v16  ;;  %vm365_vm2 = vcmp.lt.s32.totalorder %v1096_v19, 1  ;;  %vm368_vm3 = vcmp.lt.s32.totalorder %v1096_v19, 4 }
  0xc0   : > { %v351_v24 = vshrl.u32 %v921_v22, %v1094_v17  ;;  %v354_v26 = vshrl.u32 %v922_v25, %v1094_v17  ;;  %v357_v29 = vshrl.u32 %v923_v28, %v1094_v17  ;;  %v360_v32 = vshrl.u32 %v924_v31, %v1094_v17 }
  0xc1   : > { %v363_v35 = vshrl.u32 %v925_v34, %v1094_v17  ;;  %vm367_vm4 = vcmp.lt.s32.totalorder %v1096_v19, 3  ;;  %vm366_vm5 = vcmp.lt.s32.totalorder %v1096_v19, 2  ;;  %v349_v15 = vshrl.u32 %v920_v20, %v1094_v17 }
  0xc2   : > { %v352_v36 = vor.u32 %v351_v24, %v350_v21  ;;  %v355_v37 = vor.u32 %v354_v26, %v353_v23  ;;  %v358_v38 = vor.u32 %v357_v29, %v356_v27  ;;  %v361_v39 = vor.u32 %v360_v32, %v359_v30 }
  0xc3   : > { %v364_v40 = vor.u32 %v363_v35, %v362_v33 }
  0xc4   : > { %v373_v42 = vsel %vm365_vm2, %v352_v36, %v355_v37  ;;  %v377_v43 = vsel %vm365_vm2, %v355_v37, %v358_v38  ;;  %v374_v44 = vsel %vm368_vm3, %v361_v39, 920167782  ;;  %v370_v11 = vsel %vm368_vm3, %v358_v38, 2102212464 }
  0xc5   : > { %v378_v45 = vsel %vm368_vm3, %v364_v40, 1326507024  ;;  %v375_v46 = vsel %vm367_vm4, %v358_v38, %v374_v44  ;;  %v369_v24 = vsel %vm365_vm2, %v349_v15, %v352_v36  ;;  %v371_v25 = vsel %vm367_vm4, %v355_v37, %v370_v11 }
  0xc6   : > { %v379_v47 = vsel %vm367_vm4, %v361_v39, %v378_v45  ;;  %v376_v48 = vsel %vm366_vm5, %v373_v42, %v375_v46  ;;  %v372_v17 = vsel %vm366_vm5, %v369_v24, %v371_v25  ;;  %vm488_vm2 = vcmask 261120  }
  0xc7   : > { %v380_v49 = vsel %vm366_vm5, %v377_v43, %v379_v47  ;;  %v406_v54 = vand.u32 65535, %v376_v48  ;;  %v407_v55 = vshrl.u32 %v376_v48, 16  ;;  %v426_v33 = vmul.u32 %v1105_v41, %v372_v17 }
  0xc8   : > { %v384_v52 = vand.u32 65535, %v380_v49  ;;  %v385_v53 = vshrl.u32 %v380_v49, 16  ;;  %vm476_vm3 = vweird.f32 %v1088_v7 }
  0xc9   : > { %v409_v58 = vmul.u32 %v407_v55, %v382_v50  ;;  %v410_v59 = vmul.u32 %v406_v54, %v383_v51  ;;  %v408_v63 = vmul.u32 %v406_v54, %v382_v50  ;;  %v411_v3 = vmul.u32 %v407_v55, %v383_v51 }
  0xca   : > { %v387_v56 = vmul.u32 %v385_v53, %v382_v50  ;;  %v388_v57 = vmul.u32 %v384_v52, %v383_v51  ;;  %v386_v60 = vmul.u32 %v384_v52, %v382_v50  ;;  %v389_v62 = vmul.u32 %v385_v53, %v383_v51 }
  0xcb   : > { %v412_v0 = vshll.u32 %v409_v58, 16  ;;  %v414_v6 = vshll.u32 %v410_v59, 16  ;;  %v413_v22 = vshrl.u32 %v409_v58, 16  ;;  %v415_v28 = vshrl.u32 %v410_v59, 16 }
  0xcc   : > { %v390_v61 = vshll.u32 %v387_v56, 16  ;;  %v392_v1 = vshll.u32 %v388_v57, 16  ;;  %v391_v16 = vshrl.u32 %v387_v56, 16  ;;  %v393_v26 = vshrl.u32 %v388_v57, 16 }
  0xcd   : > { %vm416_vm7 = vc.u32 %v408_v63, %v412_v0  ;;  %v418_v8 = vadd.s32 %v412_v0, %v408_v63 }
  0xce   : > { %vm394_vm6 = vc.u32 %v386_v60, %v390_v61  ;;  %v396_v2 = vadd.s32 %v390_v61, %v386_v60  ;;  %v417_v10 = vsel %vm416_vm7, 1, %v926_v4 }
  0xcf   : > { %v395_v5 = vsel %vm394_vm6, 1, %v926_v4  ;;  %v419_v14 = vadd.s32 %v417_v10, %v411_v3  ;;  %vm420_vm9 = vc.u32 %v418_v8, %v414_v6  ;;  %v422_v31 = vadd.s32 %v418_v8, %v414_v6 }
  0xd0   : > { %v397_v9 = vadd.s32 %v395_v5, %v389_v62  ;;  %vm398_vm8 = vc.u32 %v396_v2, %v392_v1  ;;  %v421_v21 = vsel %vm420_vm9, 1, %v926_v4 }
  0xd1   : > { %v399_v13 = vsel %vm398_vm8, 1, %v926_v4  ;;  %v423_v23 = vadd.s32 %v421_v21, %v419_v14 }
  0xd2   : > { %v401_v18 = vadd.s32 %v399_v13, %v397_v9 }
  0xd3   : > { %v424_v29 = vadd.s32 %v423_v23, %v413_v22 }
  0xd4   : > { %v402_v27 = vadd.s32 %v401_v18, %v391_v16 }
  0xd5   : > { %v425_v20 = vadd.s32 %v424_v29, %v415_v28 }
  0xd6   : > { %v403_v30 = vadd.s32 %v402_v27, %v393_v26 }
  0xd7   : > { %v429_v32 = vadd.s32 1, %v425_v20 }
  0xd8   : > { %vm428_vm10 = vc.u32 %v403_v30, %v422_v31  ;;  %v427_v19 = vadd.s32 %v422_v31, %v403_v30 }
  0xd9   : > { %v430_v34 = vsel %vm428_vm10, %v429_v32, %v425_v20 }
  0xda   : > { %v431_v35 = vadd.s32 %v430_v34, %v426_v33 }
  0xdc   : > { %v432_v36 = vadd.s32 536870912, %v431_v35 }
  0xde   : > { %v433_v38 = vshrl.u32 %v432_v36, 30 }
  0xe0   : > { %v434_v39 = vshll.u32 %v433_v38, 30  ;;  %v457_v58 = vsub.s32 4, %v433_v38 }
  0xe2   : > { %v435_v37 = vsub.s32 %v431_v35, %v434_v39  ;;  %v458_v63 = vsel %vm335_vm13, %v457_v58, %v433_v38 }
  0xe3   : > { %v460_v2 = vsel %vm334_vm14, 0, %v458_v63 }
  0xe4   : > { %vm436_vm11 = vcmp.lt.s32.totalorder %v435_v37, 0  ;;  %v437_v40 = vsub.s32 0, %v435_v37  ;;  %v477_v8 = vadd.s32 3, %v460_v2 }
  0xe6   : > { %v438_v42 = vsel %vm436_vm11, %v437_v40, %v435_v37  ;;  %v478_v13 = vand.u32 3, %v477_v8 }
  0xe7   : > { %v439_v43 = vclz %v438_v42 }
  0xe8   : > { %vm480_vm15 = vcmp.eq.s32.totalorder %v478_v13, 0  ;;  %vm483_vm0 = vcmp.eq.s32.totalorder %v478_v13, 2  ;;  %vm479_vm1 = vcmp.lt.s32.totalorder %v478_v13, 2 }
  0xe9   : > { %v639_v44 = vadd.s32 4294967294, %v439_v43 }
  0xeb   : > { %vm640_vm12 = vcmp.lt.s32.totalorder %v639_v44, 0 }
  0xec   : > { %v442_v45 = vsel %vm640_vm12, 0, %v639_v44 }
  0xed   : > { %v443_v46 = vsub.s32 32, %v442_v45  ;;  %v447_v47 = vsub.s32 4294967266, %v442_v45  ;;  %v444_v48 = vshll.u32 %v435_v37, %v442_v45 }
  0xef   : > { %v445_v49 = vshrl.u32 %v427_v19, %v443_v46  ;;  %v448_v50 = vadd.s32 127, %v447_v47 }
  0xf1   : > { %v446_v41 = vor.u32 %v445_v49, %v444_v48  ;;  %v449_v51 = vshll.u32 %v448_v50, 23 }
  0xf3   : > { %v450_v52 = vor.u32 4788187, %v449_v51  ;;  %v453_v54 = vcvt.s32.f32 %v446_v41 }
  0xf5   : > { %v451_v53 = vand.u32 2147483647, %v450_v52 }
  0xf7   : > { %v454_v55 = vmul.f32 %v453_v54, %v451_v53 }
  0xf9   : > { %v455_v56 = vxor.u32 2147483648, %v454_v55 }
  0xfb   : > { %v456_v57 = vsel %vm335_vm13, %v455_v56, %v454_v55 }
  0xfc   : > { %v459_v59 = vsel %vm334_vm14, %v1088_v7, %v456_v57 }
  0xfd   : > { %v461_v60 = vmul.f32 %v459_v59, %v459_v59 }
  0xff   : > { %v469_v61 = vmul.f32 -0.00019511016, %v461_v60  ;;  %v462_v62 = vmul.f32 -0.001358992, %v461_v60 }
 0x101   : > { %v470_v0 = vadd.f32 0.008332121, %v469_v61  ;;  %v463_v1 = vadd.f32 0.041655596, %v462_v62 }
 0x103   : > { %v471_v3 = vmul.f32 %v470_v0, %v461_v60  ;;  %v464_v4 = vmul.f32 %v463_v1, %v461_v60 }
 0x105   : > { %v472_v5 = vadd.f32 -0.16666654, %v471_v3  ;;  %v465_v6 = vadd.f32 -0.4999988, %v464_v4 }
 0x107   : > { %v473_v9 = vmul.f32 %v472_v5, %v461_v60  ;;  %v466_v12 = vmul.f32 %v465_v6, %v461_v60 }
 0x109   : > { %v474_v10 = vadd.f32 1.0, %v473_v9  ;;  %v467_v11 = vadd.f32 1.0, %v466_v12 }
 0x10b   : > { %v475_v14 = vmul.f32 %v474_v10, %v459_v59  ;;  %v484_v15 = vxor.u32 2147483648, %v467_v11 }
 0x10d   : > { %v481_v16 = vxor.u32 2147483648, %v475_v14  ;;  %v485_v21 = vsel %vm483_vm0, %v484_v15, %v475_v14 }
 0x10f   : > { %v482_v18 = vsel %vm480_vm15, %v467_v11, %v481_v16 }
 0x110   : > { %v486_v22 = vsel %vm479_vm1, %v482_v18, %v485_v21 }
 0x111   : > { %v487_v23 = vsel %vm476_vm3, nan, %v486_v22 }
 0x112   : > { %489 = vst.msk [vmem:[%s291_s13] sm:$0xff] %vm488_vm2, %v487_v23 }
 0x113   : > { %852 = shalt.err (!%p849_p2)
}
 0x114   : > { %654 = dma.vmem_to_hbm [thread:$0]  (%p1002_p8), %s505_s26, 128, %s507_s25, %s491_s18  }
 0x115 PF: > { %s518_s9 = sand.u32 1, %s895_s15   ;;  %p668_p4 = pnand %p626_p10, %p1009_p9 }
 0x116   : > { %s519_s6 = scalar_lea.sflag [#allocation4], %s518_s9 }
 0x117   : > { %p669_p3 = pneg %p668_p4 }
 0x119   : > { %890 = dma.done.wait (%p669_p3), %s519_s6, 128  }
 0x11a   : > { %892 = vsyncadd (%p669_p3), %s519_s6, 4294967168  ;;  %s21_s20 = sadd.s32 1, %s915_s20   ;;  %s1197_s15 = smov %s899_s16 }
 0x11b   : > { %p18_p5 = scmp.ge.s32.totalorder %s21_s20, 4   ;;  %s1198_s16 = smov %s903_s17 }
 0x11c   : > { %s1199_s17 = smov %s1014_s29  ;;  %s1200_s18 = smov %s911_s19 }
 0x11d   : > { %s1201_s19 = smov %s1203_s23  ;;  %20 = sbr.rel (!%p18_p5) target bundleno = 9 (0x9), region = 99 }
 0x122   :  { %525 = vsyncpa [#allocation3], 1 }
 0x123   :  { %527 = vsyncpa [#allocation3 + $0x1], 1 }
 0x124   :  { %528 = vsyncpa [#allocation6], 1 }
 0x125   :  { %529 = vsyncpa [#allocation4], 1 }
 0x126   :  { %531 = vsyncpa [#allocation4 + $0x1], 1 }

</bundles_post_ra>
